<compile_context>
chip_gen: v6e
topology: v6e:2x2x1
jax: 0.10.0
libtpu: 0.0.40
codegen_flags: <defaults>
</compile_context>

<pallas_src>
import functools

import jax
import jax.numpy as jnp
from jax import lax
from jax.experimental import pallas as pl
from jax.experimental.pallas import tpu as pltpu


def _interpolator_kernel(f1_ref, f2_ref, sv_ref, mask_ref, w_ref, b_ref,
                         o_ref, xcat_ref, *, C, H, W, Bblk):
    """One block = Bblk batch samples packed along the lane axis as (C, Bblk*H*W)."""
    HW = H * W
    L = Bblk * HW

    f1 = f1_ref[0].astype(jnp.float32)            # (C, L)
    y = f2_ref[0].astype(jnp.float32) - f1        # feat2 - feat1

    # Flat shifts for the 9 taps, tap-major (oy outer, ox inner) -- matches the
    # (Cout, kh, kw, Cin) weight flattening done on the host.
    shifts = tuple(oy * W + ox for oy in (-1, 0, 1) for ox in (-1, 0, 1))

    def conv3x3(x, layer):
        # Build the (9*C, L) tap matrix in the persistent VMEM scratch.
        # pltpu.roll gives t[:, i] == x[:, (i + s) mod L]; every lane whose read wraps,
        # leaves the image, or crosses a sample seam is zeroed by the precomputed mask.
        for k, s in enumerate(shifts):
            if s == 0:
                xcat_ref[pl.ds(k * C, C), :] = x            # center tap, mask == 1
            else:
                t = pltpu.roll(x, shift=(-s) % L, axis=1)    # t[:, i] == x[:, i + s]
                xcat_ref[pl.ds(k * C, C), :] = t * mask_ref[pl.ds(k * C, C), :]
        out = jnp.dot(w_ref[layer], xcat_ref[...],
                      preferred_element_type=jnp.float32)    # (C, L) on the MXU
        return out + b_ref[layer]                            # (C, 1) broadcast over lanes

    h = jnp.maximum(conv3x3(y, 0), 0.0)
    h = jnp.maximum(conv3x3(h, 1), 0.0)
    h = conv3x3(h, 2)

    sv = sv_ref[0].astype(jnp.float32)            # (C, Bblk)
    if Bblk == 1:
        svb = sv                                  # (C, 1) broadcasts over all lanes
    else:
        svb = jnp.broadcast_to(sv[:, :, None], (C, Bblk, HW)).reshape(C, L)
    o_ref[0] = (f1 + h * svb).astype(o_ref.dtype)


def _to_kernel_weight(w):
    # PyTorch Conv2d layout (Cout, Cin, 3, 3) -> (Cout, 9*Cin), tap-major then Cin.
    cout, cin = w.shape[0], w.shape[1]
    return jnp.transpose(w, (0, 2, 3, 1)).reshape(cout, 9 * cin)


def _edge_masks(H, W, C, Bblk, dtype=jnp.float32):
    """(9*C, Bblk*H*W) f32 mask; row k*C + c holds the validity mask of tap k."""
    rr, cc = jnp.meshgrid(jnp.arange(H), jnp.arange(W), indexing="ij")
    rows = []
    for oy in (-1, 0, 1):
        for ox in (-1, 0, 1):
            ok = ((rr + oy >= 0) & (rr + oy < H) & (cc + ox >= 0) & (cc + ox < W))
            rows.append(ok.reshape(-1))
    m = jnp.stack(rows).astype(dtype)             # (9, HW)
    m = jnp.repeat(m, C, axis=0)                  # (9*C, HW)
    return jnp.tile(m, (1, Bblk))                 # (9*C, Bblk*HW)


@jax.jit
def interpolator_forward(feat1, feat2, selective_vector, params):
    """feat1, feat2: (N, C, H, W); selective_vector: (N, C, 1, 1);
    params: [(w, b)] * 3 with w in PyTorch layout (C, C, 3, 3) and b (C,)."""
    B, C, H, W = feat1.shape
    HW = H * W

    # >= 2 parallel grid blocks when possible (v7x megacore); larger batches are packed
    # along the lane axis inside each block to amortize the ~0.35us per-grid-step overhead.
    n_blocks = min(B, 2)
    Bblk = -(-B // n_blocks)                      # ceil(B / n_blocks)
    Bp = n_blocks * Bblk
    L = Bblk * HW

    def pack(x):                                  # (B, C, H, W) -> (n_blocks, C, Bblk*HW)
        x = x.reshape(B, C, HW)
        if Bp != B:
            x = jnp.concatenate([x, jnp.zeros((Bp - B, C, HW), x.dtype)], axis=0)
        x = x.reshape(n_blocks, Bblk, C, HW).transpose(0, 2, 1, 3)
        return x.reshape(n_blocks, C, L)

    f1 = pack(feat1)
    f2 = pack(feat2)

    sv = selective_vector.reshape(B, C)
    if Bp != B:
        sv = jnp.concatenate([sv, jnp.zeros((Bp - B, C), sv.dtype)], axis=0)
    sv = sv.reshape(n_blocks, Bblk, C).transpose(0, 2, 1)        # (n_blocks, C, Bblk)

    mask = _edge_masks(H, W, C, Bblk)                             # (9*C, L)
    w_all = jnp.stack([_to_kernel_weight(w) for (w, _) in params])  # (3, C, 9*C)
    b_all = jnp.stack([b.reshape(C, 1) for (_, b) in params])       # (3, C, 1)

    kernel = functools.partial(_interpolator_kernel, C=C, H=H, W=W, Bblk=Bblk)
    act_spec = pl.BlockSpec((1, C, L), lambda i: (i, 0, 0))

    out = pl.pallas_call(
        kernel,
        out_shape=jax.ShapeDtypeStruct((n_blocks, C, L), feat1.dtype),
        grid_spec=pltpu.PrefetchScalarGridSpec(
            num_scalar_prefetch=0,
            grid=(n_blocks,),
            in_specs=[act_spec, act_spec,
                      pl.BlockSpec((1, C, Bblk), lambda i: (i, 0, 0)),
                      pl.BlockSpec((9 * C, L), lambda i: (0, 0)),        # masks, resident
                      pl.BlockSpec((3, C, 9 * C), lambda i: (0, 0, 0)),  # weights, resident
                      pl.BlockSpec((3, C, 1), lambda i: (0, 0, 0))],     # biases, resident
            out_specs=act_spec,
            scratch_shapes=[pltpu.VMEM((9 * C, L), jnp.float32)],
        ),
        compiler_params=pltpu.CompilerParams(
            dimension_semantics=("parallel",),
            vmem_limit_bytes=32 * 1024 * 1024,
        ),
        cost_estimate=pl.CostEstimate(
            flops=2 * 3 * Bp * C * 9 * C * HW,
            transcendentals=0,
            bytes_accessed=4 * (3 * Bp * C * HW + Bp * C + 9 * C * L
                                + 3 * C * 9 * C + 3 * C),
        ),
    )(f1, f2, sv, mask, w_all, b_all)

    out = out.reshape(n_blocks, C, Bblk, HW).transpose(0, 2, 1, 3)
    return out.reshape(Bp, C, H, W)[:B]


def init_interpolator_params(key, channels, dtype=jnp.float32):
    """3x Conv2d(channels, channels, 3, padding=1) with PyTorch default init."""
    params = []
    fan_in = channels * 3 * 3
    bound = 1.0 / (fan_in ** 0.5)
    for _ in range(3):
        key, kw, kb = jax.random.split(key, 3)
        w = jax.random.uniform(kw, (channels, channels, 3, 3), dtype, -bound, bound)
        b = jax.random.uniform(kb, (channels,), dtype, -bound, bound)
        params.append((w, b))
    return params


def _reference(feat1, feat2, selective_vector, params):
    h = feat2 - feat1
    for i, (w, b) in enumerate(params):
        h = lax.conv_general_dilated(
            h, w, window_strides=(1, 1), padding=((1, 1), (1, 1)),
            dimension_numbers=("NCHW", "OIHW", "NCHW"),
            precision=lax.Precision.HIGHEST)
        h = h + b.reshape(1, -1, 1, 1)
        if i < 2:
            h = jnp.maximum(h, 0.0)
    return feat1 + h * selective_vector


if __name__ == "__main__":
    key = jax.random.PRNGKey(0)
    k1, k2, k3, kp = jax.random.split(key, 4)

    # channels=8 (module default), batch=2, 16x16 spatial.
    B, C, H, W = 2, 8, 16, 16
    feat1 = jax.random.normal(k1, (B, C, H, W), jnp.float32)
    feat2 = jax.random.normal(k2, (B, C, H, W), jnp.float32)
    selective_vector = jax.random.uniform(k3, (B, C, 1, 1), jnp.float32)
    params = init_interpolator_params(kp, C)

    out = interpolator_forward(feat1, feat2, selective_vector, params)
    out = jax.block_until_ready(out)

    ref = _reference(feat1, feat2, selective_vector, params)
    assert out.shape == (B, C, H, W), out.shape
    max_err = float(jnp.max(jnp.abs(out - ref)))
    assert jnp.allclose(out, ref, atol=1e-3, rtol=1e-3), max_err

    print("KERNEL_OK")
</pallas_src>

<mosaic_0001>
module attributes {stable_mosaic.version = 11 : i64} {
  func.func @_interpolator_kernel(%arg0: i32, %arg1: memref<1x8x256xf32, #tpu.memory_space<vmem>>, %arg2: memref<1x8x256xf32, #tpu.memory_space<vmem>>, %arg3: memref<1x8x1xf32, #tpu.memory_space<vmem>>, %arg4: memref<72x256xf32, #tpu.memory_space<vmem>>, %arg5: memref<3x8x72xf32, #tpu.memory_space<vmem>>, %arg6: memref<3x8x1xf32, #tpu.memory_space<vmem>>, %arg7: memref<1x8x256xf32, #tpu.memory_space<vmem>>, %arg8: memref<72x256xf32, #tpu.memory_space<vmem>>) attributes {dimension_semantics = [#tpu.dimension_semantics<parallel>], iteration_bounds = array<i64: 2>, scalar_prefetch = 0 : i64, scratch_operands = 1 : i64, tpu.core_type = #tpu.core_type<tc>, window_params = [{transform_indices = @transform_0, window_bounds = array<i64: 1, 8, 256>}, {transform_indices = @transform_1, window_bounds = array<i64: 1, 8, 256>}, {transform_indices = @transform_2, window_bounds = array<i64: 1, 8, 1>}, {pipeline_mode = #tpu.pipeline_mode<synchronous>, transform_indices = @transform_3, window_bounds = array<i64: 72, 256>}, {pipeline_mode = #tpu.pipeline_mode<synchronous>, transform_indices = @transform_4, window_bounds = array<i64: 3, 8, 72>}, {pipeline_mode = #tpu.pipeline_mode<synchronous>, transform_indices = @transform_5, window_bounds = array<i64: 3, 8, 1>}, {transform_indices = @transform_6, window_bounds = array<i64: 1, 8, 256>}]} {
    %c0 = arith.constant 0 : index
    %c0_0 = arith.constant 0 : index
    %c0_1 = arith.constant 0 : index
    %0 = vector.load %arg1[%c0, %c0_0, %c0_1] : memref<1x8x256xf32, #tpu.memory_space<vmem>>, vector<1x8x256xf32>
    %1 = vector.shape_cast %0 : vector<1x8x256xf32> to vector<8x256xf32>
    %c0_2 = arith.constant 0 : index
    %c0_3 = arith.constant 0 : index
    %c0_4 = arith.constant 0 : index
    %2 = vector.load %arg2[%c0_2, %c0_3, %c0_4] : memref<1x8x256xf32, #tpu.memory_space<vmem>>, vector<1x8x256xf32>
    %3 = vector.shape_cast %2 : vector<1x8x256xf32> to vector<8x256xf32>
    %4 = arith.subf %3, %1 : vector<8x256xf32>
    %c17_i32 = arith.constant 17 : i32
    %5 = tpu.dynamic_rotate %4 by %c17_i32 dim 1 : vector<8x256xf32>, i32 -> vector<8x256xf32>
    %c0_5 = arith.constant 0 : index
    %c0_6 = arith.constant 0 : index
    %6 = vector.load %arg4[%c0_5, %c0_6] : memref<72x256xf32, #tpu.memory_space<vmem>>, vector<8x256xf32>
    %7 = arith.mulf %5, %6 : vector<8x256xf32>
    %c0_7 = arith.constant 0 : index
    %c0_8 = arith.constant 0 : index
    %8 = vector.load %arg8[%c0_7, %c0_8] : memref<72x256xf32, #tpu.memory_space<vmem>>, vector<8x256xf32>
    tpu.vector_store %arg8[%c0_7, %c0_8], %7 {strides = array<i32>} : memref<72x256xf32, #tpu.memory_space<vmem>>, vector<8x256xf32>,
    %c16_i32 = arith.constant 16 : i32
    %9 = tpu.dynamic_rotate %4 by %c16_i32 dim 1 : vector<8x256xf32>, i32 -> vector<8x256xf32>
    %c8 = arith.constant 8 : index
    %c0_9 = arith.constant 0 : index
    %10 = vector.load %arg4[%c8, %c0_9] : memref<72x256xf32, #tpu.memory_space<vmem>>, vector<8x256xf32>
    %11 = arith.mulf %9, %10 : vector<8x256xf32>
    %c8_10 = arith.constant 8 : index
    %c0_11 = arith.constant 0 : index
    %12 = vector.load %arg8[%c8_10, %c0_11] : memref<72x256xf32, #tpu.memory_space<vmem>>, vector<8x256xf32>
    tpu.vector_store %arg8[%c8_10, %c0_11], %11 {strides = array<i32>} : memref<72x256xf32, #tpu.memory_space<vmem>>, vector<8x256xf32>,
    %c15_i32 = arith.constant 15 : i32
    %13 = tpu.dynamic_rotate %4 by %c15_i32 dim 1 : vector<8x256xf32>, i32 -> vector<8x256xf32>
    %c16 = arith.constant 16 : index
    %c0_12 = arith.constant 0 : index
    %14 = vector.load %arg4[%c16, %c0_12] : memref<72x256xf32, #tpu.memory_space<vmem>>, vector<8x256xf32>
    %15 = arith.mulf %13, %14 : vector<8x256xf32>
    %c16_13 = arith.constant 16 : index
    %c0_14 = arith.constant 0 : index
    %16 = vector.load %arg8[%c16_13, %c0_14] : memref<72x256xf32, #tpu.memory_space<vmem>>, vector<8x256xf32>
    tpu.vector_store %arg8[%c16_13, %c0_14], %15 {strides = array<i32>} : memref<72x256xf32, #tpu.memory_space<vmem>>, vector<8x256xf32>,
    %c1_i32 = arith.constant 1 : i32
    %17 = tpu.dynamic_rotate %4 by %c1_i32 dim 1 : vector<8x256xf32>, i32 -> vector<8x256xf32>
    %c24 = arith.constant 24 : index
    %c0_15 = arith.constant 0 : index
    %18 = vector.load %arg4[%c24, %c0_15] : memref<72x256xf32, #tpu.memory_space<vmem>>, vector<8x256xf32>
    %19 = arith.mulf %17, %18 : vector<8x256xf32>
    %c24_16 = arith.constant 24 : index
    %c0_17 = arith.constant 0 : index
    %20 = vector.load %arg8[%c24_16, %c0_17] : memref<72x256xf32, #tpu.memory_space<vmem>>, vector<8x256xf32>
    tpu.vector_store %arg8[%c24_16, %c0_17], %19 {strides = array<i32>} : memref<72x256xf32, #tpu.memory_space<vmem>>, vector<8x256xf32>,
    %c32 = arith.constant 32 : index
    %c0_18 = arith.constant 0 : index
    %21 = vector.load %arg8[%c32, %c0_18] : memref<72x256xf32, #tpu.memory_space<vmem>>, vector<8x256xf32>
    tpu.vector_store %arg8[%c32, %c0_18], %4 {strides = array<i32>} : memref<72x256xf32, #tpu.memory_space<vmem>>, vector<8x256xf32>,
    %c255_i32 = arith.constant 255 : i32
    %22 = tpu.dynamic_rotate %4 by %c255_i32 dim 1 : vector<8x256xf32>, i32 -> vector<8x256xf32>
    %c40 = arith.constant 40 : index
    %c0_19 = arith.constant 0 : index
    %23 = vector.load %arg4[%c40, %c0_19] : memref<72x256xf32, #tpu.memory_space<vmem>>, vector<8x256xf32>
    %24 = arith.mulf %22, %23 : vector<8x256xf32>
    %c40_20 = arith.constant 40 : index
    %c0_21 = arith.constant 0 : index
    %25 = vector.load %arg8[%c40_20, %c0_21] : memref<72x256xf32, #tpu.memory_space<vmem>>, vector<8x256xf32>
    tpu.vector_store %arg8[%c40_20, %c0_21], %24 {strides = array<i32>} : memref<72x256xf32, #tpu.memory_space<vmem>>, vector<8x256xf32>,
    %c241_i32 = arith.constant 241 : i32
    %26 = tpu.dynamic_rotate %4 by %c241_i32 dim 1 : vector<8x256xf32>, i32 -> vector<8x256xf32>
    %c48 = arith.constant 48 : index
    %c0_22 = arith.constant 0 : index
    %27 = vector.load %arg4[%c48, %c0_22] : memref<72x256xf32, #tpu.memory_space<vmem>>, vector<8x256xf32>
    %28 = arith.mulf %26, %27 : vector<8x256xf32>
    %c48_23 = arith.constant 48 : index
    %c0_24 = arith.constant 0 : index
    %29 = vector.load %arg8[%c48_23, %c0_24] : memref<72x256xf32, #tpu.memory_space<vmem>>, vector<8x256xf32>
    tpu.vector_store %arg8[%c48_23, %c0_24], %28 {strides = array<i32>} : memref<72x256xf32, #tpu.memory_space<vmem>>, vector<8x256xf32>,
    %c240_i32 = arith.constant 240 : i32
    %30 = tpu.dynamic_rotate %4 by %c240_i32 dim 1 : vector<8x256xf32>, i32 -> vector<8x256xf32>
    %c56 = arith.constant 56 : index
    %c0_25 = arith.constant 0 : index
    %31 = vector.load %arg4[%c56, %c0_25] : memref<72x256xf32, #tpu.memory_space<vmem>>, vector<8x256xf32>
    %32 = arith.mulf %30, %31 : vector<8x256xf32>
    %c56_26 = arith.constant 56 : index
    %c0_27 = arith.constant 0 : index
    %33 = vector.load %arg8[%c56_26, %c0_27] : memref<72x256xf32, #tpu.memory_space<vmem>>, vector<8x256xf32>
    tpu.vector_store %arg8[%c56_26, %c0_27], %32 {strides = array<i32>} : memref<72x256xf32, #tpu.memory_space<vmem>>, vector<8x256xf32>,
    %c239_i32 = arith.constant 239 : i32
    %34 = tpu.dynamic_rotate %4 by %c239_i32 dim 1 : vector<8x256xf32>, i32 -> vector<8x256xf32>
    %c64 = arith.constant 64 : index
    %c0_28 = arith.constant 0 : index
    %35 = vector.load %arg4[%c64, %c0_28] : memref<72x256xf32, #tpu.memory_space<vmem>>, vector<8x256xf32>
    %36 = arith.mulf %34, %35 : vector<8x256xf32>
    %c64_29 = arith.constant 64 : index
    %c0_30 = arith.constant 0 : index
    %37 = vector.load %arg8[%c64_29, %c0_30] : memref<72x256xf32, #tpu.memory_space<vmem>>, vector<8x256xf32>
    tpu.vector_store %arg8[%c64_29, %c0_30], %36 {strides = array<i32>} : memref<72x256xf32, #tpu.memory_space<vmem>>, vector<8x256xf32>,
    %c0_31 = arith.constant 0 : index
    %c0_32 = arith.constant 0 : index
    %c0_33 = arith.constant 0 : index
    %38 = vector.load %arg5[%c0_31, %c0_32, %c0_33] : memref<3x8x72xf32, #tpu.memory_space<vmem>>, vector<1x8x72xf32>
    %39 = vector.shape_cast %38 : vector<1x8x72xf32> to vector<8x72xf32>
    %c0_34 = arith.constant 0 : index
    %c0_35 = arith.constant 0 : index
    %40 = vector.load %arg8[%c0_34, %c0_35] : memref<72x256xf32, #tpu.memory_space<vmem>>, vector<72x256xf32>
    %cst = arith.constant dense<0.000000e+00> : vector<8x256xf32>
    %41 = tpu.matmul %39, %40, %cst {dimension_numbers = #tpu.dot_dimension_numbers<[1], [0], [0], [1], [0, 0, 1, 1], [], []>} : vector<8x72xf32>, vector<72x256xf32>, vector<8x256xf32> -> vector<8x256xf32>
    %c0_36 = arith.constant 0 : index
    %c0_37 = arith.constant 0 : index
    %c0_38 = arith.constant 0 : index
    %42 = vector.load %arg6[%c0_36, %c0_37, %c0_38] : memref<3x8x1xf32, #tpu.memory_space<vmem>>, vector<1x8x1xf32>
    %43 = vector.shape_cast %42 : vector<1x8x1xf32> to vector<8x1xf32>
    %44 = vector.broadcast %43 : vector<8x1xf32> to vector<8x256xf32>
    %45 = arith.addf %41, %44 : vector<8x256xf32>
    %cst_39 = arith.constant 0.000000e+00 : f32
    %46 = vector.broadcast %cst_39 : f32 to vector<8x256xf32>
    %47 = arith.maximumf %45, %46 : vector<8x256xf32>
    %c17_i32_40 = arith.constant 17 : i32
    %48 = tpu.dynamic_rotate %47 by %c17_i32_40 dim 1 : vector<8x256xf32>, i32 -> vector<8x256xf32>
    %c0_41 = arith.constant 0 : index
    %c0_42 = arith.constant 0 : index
    %49 = vector.load %arg4[%c0_41, %c0_42] : memref<72x256xf32, #tpu.memory_space<vmem>>, vector<8x256xf32>
    %50 = arith.mulf %48, %49 : vector<8x256xf32>
    %c0_43 = arith.constant 0 : index
    %c0_44 = arith.constant 0 : index
    %51 = vector.load %arg8[%c0_43, %c0_44] : memref<72x256xf32, #tpu.memory_space<vmem>>, vector<8x256xf32>
    tpu.vector_store %arg8[%c0_43, %c0_44], %50 {strides = array<i32>} : memref<72x256xf32, #tpu.memory_space<vmem>>, vector<8x256xf32>,
    %c16_i32_45 = arith.constant 16 : i32
    %52 = tpu.dynamic_rotate %47 by %c16_i32_45 dim 1 : vector<8x256xf32>, i32 -> vector<8x256xf32>
    %c8_46 = arith.constant 8 : index
    %c0_47 = arith.constant 0 : index
    %53 = vector.load %arg4[%c8_46, %c0_47] : memref<72x256xf32, #tpu.memory_space<vmem>>, vector<8x256xf32>
    %54 = arith.mulf %52, %53 : vector<8x256xf32>
    %c8_48 = arith.constant 8 : index
    %c0_49 = arith.constant 0 : index
    %55 = vector.load %arg8[%c8_48, %c0_49] : memref<72x256xf32, #tpu.memory_space<vmem>>, vector<8x256xf32>
    tpu.vector_store %arg8[%c8_48, %c0_49], %54 {strides = array<i32>} : memref<72x256xf32, #tpu.memory_space<vmem>>, vector<8x256xf32>,
    %c15_i32_50 = arith.constant 15 : i32
    %56 = tpu.dynamic_rotate %47 by %c15_i32_50 dim 1 : vector<8x256xf32>, i32 -> vector<8x256xf32>
    %c16_51 = arith.constant 16 : index
    %c0_52 = arith.constant 0 : index
    %57 = vector.load %arg4[%c16_51, %c0_52] : memref<72x256xf32, #tpu.memory_space<vmem>>, vector<8x256xf32>
    %58 = arith.mulf %56, %57 : vector<8x256xf32>
    %c16_53 = arith.constant 16 : index
    %c0_54 = arith.constant 0 : index
    %59 = vector.load %arg8[%c16_53, %c0_54] : memref<72x256xf32, #tpu.memory_space<vmem>>, vector<8x256xf32>
    tpu.vector_store %arg8[%c16_53, %c0_54], %58 {strides = array<i32>} : memref<72x256xf32, #tpu.memory_space<vmem>>, vector<8x256xf32>,
    %c1_i32_55 = arith.constant 1 : i32
    %60 = tpu.dynamic_rotate %47 by %c1_i32_55 dim 1 : vector<8x256xf32>, i32 -> vector<8x256xf32>
    %c24_56 = arith.constant 24 : index
    %c0_57 = arith.constant 0 : index
    %61 = vector.load %arg4[%c24_56, %c0_57] : memref<72x256xf32, #tpu.memory_space<vmem>>, vector<8x256xf32>
    %62 = arith.mulf %60, %61 : vector<8x256xf32>
    %c24_58 = arith.constant 24 : index
    %c0_59 = arith.constant 0 : index
    %63 = vector.load %arg8[%c24_58, %c0_59] : memref<72x256xf32, #tpu.memory_space<vmem>>, vector<8x256xf32>
    tpu.vector_store %arg8[%c24_58, %c0_59], %62 {strides = array<i32>} : memref<72x256xf32, #tpu.memory_space<vmem>>, vector<8x256xf32>,
    %c32_60 = arith.constant 32 : index
    %c0_61 = arith.constant 0 : index
    %64 = vector.load %arg8[%c32_60, %c0_61] : memref<72x256xf32, #tpu.memory_space<vmem>>, vector<8x256xf32>
    tpu.vector_store %arg8[%c32_60, %c0_61], %47 {strides = array<i32>} : memref<72x256xf32, #tpu.memory_space<vmem>>, vector<8x256xf32>,
    %c255_i32_62 = arith.constant 255 : i32
    %65 = tpu.dynamic_rotate %47 by %c255_i32_62 dim 1 : vector<8x256xf32>, i32 -> vector<8x256xf32>
    %c40_63 = arith.constant 40 : index
    %c0_64 = arith.constant 0 : index
    %66 = vector.load %arg4[%c40_63, %c0_64] : memref<72x256xf32, #tpu.memory_space<vmem>>, vector<8x256xf32>
    %67 = arith.mulf %65, %66 : vector<8x256xf32>
    %c40_65 = arith.constant 40 : index
    %c0_66 = arith.constant 0 : index
    %68 = vector.load %arg8[%c40_65, %c0_66] : memref<72x256xf32, #tpu.memory_space<vmem>>, vector<8x256xf32>
    tpu.vector_store %arg8[%c40_65, %c0_66], %67 {strides = array<i32>} : memref<72x256xf32, #tpu.memory_space<vmem>>, vector<8x256xf32>,
    %c241_i32_67 = arith.constant 241 : i32
    %69 = tpu.dynamic_rotate %47 by %c241_i32_67 dim 1 : vector<8x256xf32>, i32 -> vector<8x256xf32>
    %c48_68 = arith.constant 48 : index
    %c0_69 = arith.constant 0 : index
    %70 = vector.load %arg4[%c48_68, %c0_69] : memref<72x256xf32, #tpu.memory_space<vmem>>, vector<8x256xf32>
    %71 = arith.mulf %69, %70 : vector<8x256xf32>
    %c48_70 = arith.constant 48 : index
    %c0_71 = arith.constant 0 : index
    %72 = vector.load %arg8[%c48_70, %c0_71] : memref<72x256xf32, #tpu.memory_space<vmem>>, vector<8x256xf32>
    tpu.vector_store %arg8[%c48_70, %c0_71], %71 {strides = array<i32>} : memref<72x256xf32, #tpu.memory_space<vmem>>, vector<8x256xf32>,
    %c240_i32_72 = arith.constant 240 : i32
    %73 = tpu.dynamic_rotate %47 by %c240_i32_72 dim 1 : vector<8x256xf32>, i32 -> vector<8x256xf32>
    %c56_73 = arith.constant 56 : index
    %c0_74 = arith.constant 0 : index
    %74 = vector.load %arg4[%c56_73, %c0_74] : memref<72x256xf32, #tpu.memory_space<vmem>>, vector<8x256xf32>
    %75 = arith.mulf %73, %74 : vector<8x256xf32>
    %c56_75 = arith.constant 56 : index
    %c0_76 = arith.constant 0 : index
    %76 = vector.load %arg8[%c56_75, %c0_76] : memref<72x256xf32, #tpu.memory_space<vmem>>, vector<8x256xf32>
    tpu.vector_store %arg8[%c56_75, %c0_76], %75 {strides = array<i32>} : memref<72x256xf32, #tpu.memory_space<vmem>>, vector<8x256xf32>,
    %c239_i32_77 = arith.constant 239 : i32
    %77 = tpu.dynamic_rotate %47 by %c239_i32_77 dim 1 : vector<8x256xf32>, i32 -> vector<8x256xf32>
    %c64_78 = arith.constant 64 : index
    %c0_79 = arith.constant 0 : index
    %78 = vector.load %arg4[%c64_78, %c0_79] : memref<72x256xf32, #tpu.memory_space<vmem>>, vector<8x256xf32>
    %79 = arith.mulf %77, %78 : vector<8x256xf32>
    %c64_80 = arith.constant 64 : index
    %c0_81 = arith.constant 0 : index
    %80 = vector.load %arg8[%c64_80, %c0_81] : memref<72x256xf32, #tpu.memory_space<vmem>>, vector<8x256xf32>
    tpu.vector_store %arg8[%c64_80, %c0_81], %79 {strides = array<i32>} : memref<72x256xf32, #tpu.memory_space<vmem>>, vector<8x256xf32>,
    %c1 = arith.constant 1 : index
    %c0_82 = arith.constant 0 : index
    %c0_83 = arith.constant 0 : index
    %81 = vector.load %arg5[%c1, %c0_82, %c0_83] : memref<3x8x72xf32, #tpu.memory_space<vmem>>, vector<1x8x72xf32>
    %82 = vector.shape_cast %81 : vector<1x8x72xf32> to vector<8x72xf32>
    %c0_84 = arith.constant 0 : index
    %c0_85 = arith.constant 0 : index
    %83 = vector.load %arg8[%c0_84, %c0_85] : memref<72x256xf32, #tpu.memory_space<vmem>>, vector<72x256xf32>
    %cst_86 = arith.constant dense<0.000000e+00> : vector<8x256xf32>
    %84 = tpu.matmul %82, %83, %cst_86 {dimension_numbers = #tpu.dot_dimension_numbers<[1], [0], [0], [1], [0, 0, 1, 1], [], []>} : vector<8x72xf32>, vector<72x256xf32>, vector<8x256xf32> -> vector<8x256xf32>
    %c1_87 = arith.constant 1 : index
    %c0_88 = arith.constant 0 : index
    %c0_89 = arith.constant 0 : index
    %85 = vector.load %arg6[%c1_87, %c0_88, %c0_89] : memref<3x8x1xf32, #tpu.memory_space<vmem>>, vector<1x8x1xf32>
    %86 = vector.shape_cast %85 : vector<1x8x1xf32> to vector<8x1xf32>
    %87 = vector.broadcast %86 : vector<8x1xf32> to vector<8x256xf32>
    %88 = arith.addf %84, %87 : vector<8x256xf32>
    %cst_90 = arith.constant 0.000000e+00 : f32
    %89 = vector.broadcast %cst_90 : f32 to vector<8x256xf32>
    %90 = arith.maximumf %88, %89 : vector<8x256xf32>
    %c17_i32_91 = arith.constant 17 : i32
    %91 = tpu.dynamic_rotate %90 by %c17_i32_91 dim 1 : vector<8x256xf32>, i32 -> vector<8x256xf32>
    %c0_92 = arith.constant 0 : index
    %c0_93 = arith.constant 0 : index
    %92 = vector.load %arg4[%c0_92, %c0_93] : memref<72x256xf32, #tpu.memory_space<vmem>>, vector<8x256xf32>
    %93 = arith.mulf %91, %92 : vector<8x256xf32>
    %c0_94 = arith.constant 0 : index
    %c0_95 = arith.constant 0 : index
    %94 = vector.load %arg8[%c0_94, %c0_95] : memref<72x256xf32, #tpu.memory_space<vmem>>, vector<8x256xf32>
    tpu.vector_store %arg8[%c0_94, %c0_95], %93 {strides = array<i32>} : memref<72x256xf32, #tpu.memory_space<vmem>>, vector<8x256xf32>,
    %c16_i32_96 = arith.constant 16 : i32
    %95 = tpu.dynamic_rotate %90 by %c16_i32_96 dim 1 : vector<8x256xf32>, i32 -> vector<8x256xf32>
    %c8_97 = arith.constant 8 : index
    %c0_98 = arith.constant 0 : index
    %96 = vector.load %arg4[%c8_97, %c0_98] : memref<72x256xf32, #tpu.memory_space<vmem>>, vector<8x256xf32>
    %97 = arith.mulf %95, %96 : vector<8x256xf32>
    %c8_99 = arith.constant 8 : index
    %c0_100 = arith.constant 0 : index
    %98 = vector.load %arg8[%c8_99, %c0_100] : memref<72x256xf32, #tpu.memory_space<vmem>>, vector<8x256xf32>
    tpu.vector_store %arg8[%c8_99, %c0_100], %97 {strides = array<i32>} : memref<72x256xf32, #tpu.memory_space<vmem>>, vector<8x256xf32>,
    %c15_i32_101 = arith.constant 15 : i32
    %99 = tpu.dynamic_rotate %90 by %c15_i32_101 dim 1 : vector<8x256xf32>, i32 -> vector<8x256xf32>
    %c16_102 = arith.constant 16 : index
    %c0_103 = arith.constant 0 : index
    %100 = vector.load %arg4[%c16_102, %c0_103] : memref<72x256xf32, #tpu.memory_space<vmem>>, vector<8x256xf32>
    %101 = arith.mulf %99, %100 : vector<8x256xf32>
    %c16_104 = arith.constant 16 : index
    %c0_105 = arith.constant 0 : index
    %102 = vector.load %arg8[%c16_104, %c0_105] : memref<72x256xf32, #tpu.memory_space<vmem>>, vector<8x256xf32>
    tpu.vector_store %arg8[%c16_104, %c0_105], %101 {strides = array<i32>} : memref<72x256xf32, #tpu.memory_space<vmem>>, vector<8x256xf32>,
    %c1_i32_106 = arith.constant 1 : i32
    %103 = tpu.dynamic_rotate %90 by %c1_i32_106 dim 1 : vector<8x256xf32>, i32 -> vector<8x256xf32>
    %c24_107 = arith.constant 24 : index
    %c0_108 = arith.constant 0 : index
    %104 = vector.load %arg4[%c24_107, %c0_108] : memref<72x256xf32, #tpu.memory_space<vmem>>, vector<8x256xf32>
    %105 = arith.mulf %103, %104 : vector<8x256xf32>
    %c24_109 = arith.constant 24 : index
    %c0_110 = arith.constant 0 : index
    %106 = vector.load %arg8[%c24_109, %c0_110] : memref<72x256xf32, #tpu.memory_space<vmem>>, vector<8x256xf32>
    tpu.vector_store %arg8[%c24_109, %c0_110], %105 {strides = array<i32>} : memref<72x256xf32, #tpu.memory_space<vmem>>, vector<8x256xf32>,
    %c32_111 = arith.constant 32 : index
    %c0_112 = arith.constant 0 : index
    %107 = vector.load %arg8[%c32_111, %c0_112] : memref<72x256xf32, #tpu.memory_space<vmem>>, vector<8x256xf32>
    tpu.vector_store %arg8[%c32_111, %c0_112], %90 {strides = array<i32>} : memref<72x256xf32, #tpu.memory_space<vmem>>, vector<8x256xf32>,
    %c255_i32_113 = arith.constant 255 : i32
    %108 = tpu.dynamic_rotate %90 by %c255_i32_113 dim 1 : vector<8x256xf32>, i32 -> vector<8x256xf32>
    %c40_114 = arith.constant 40 : index
    %c0_115 = arith.constant 0 : index
    %109 = vector.load %arg4[%c40_114, %c0_115] : memref<72x256xf32, #tpu.memory_space<vmem>>, vector<8x256xf32>
    %110 = arith.mulf %108, %109 : vector<8x256xf32>
    %c40_116 = arith.constant 40 : index
    %c0_117 = arith.constant 0 : index
    %111 = vector.load %arg8[%c40_116, %c0_117] : memref<72x256xf32, #tpu.memory_space<vmem>>, vector<8x256xf32>
    tpu.vector_store %arg8[%c40_116, %c0_117], %110 {strides = array<i32>} : memref<72x256xf32, #tpu.memory_space<vmem>>, vector<8x256xf32>,
    %c241_i32_118 = arith.constant 241 : i32
    %112 = tpu.dynamic_rotate %90 by %c241_i32_118 dim 1 : vector<8x256xf32>, i32 -> vector<8x256xf32>
    %c48_119 = arith.constant 48 : index
    %c0_120 = arith.constant 0 : index
    %113 = vector.load %arg4[%c48_119, %c0_120] : memref<72x256xf32, #tpu.memory_space<vmem>>, vector<8x256xf32>
    %114 = arith.mulf %112, %113 : vector<8x256xf32>
    %c48_121 = arith.constant 48 : index
    %c0_122 = arith.constant 0 : index
    %115 = vector.load %arg8[%c48_121, %c0_122] : memref<72x256xf32, #tpu.memory_space<vmem>>, vector<8x256xf32>
    tpu.vector_store %arg8[%c48_121, %c0_122], %114 {strides = array<i32>} : memref<72x256xf32, #tpu.memory_space<vmem>>, vector<8x256xf32>,
    %c240_i32_123 = arith.constant 240 : i32
    %116 = tpu.dynamic_rotate %90 by %c240_i32_123 dim 1 : vector<8x256xf32>, i32 -> vector<8x256xf32>
    %c56_124 = arith.constant 56 : index
    %c0_125 = arith.constant 0 : index
    %117 = vector.load %arg4[%c56_124, %c0_125] : memref<72x256xf32, #tpu.memory_space<vmem>>, vector<8x256xf32>
    %118 = arith.mulf %116, %117 : vector<8x256xf32>
    %c56_126 = arith.constant 56 : index
    %c0_127 = arith.constant 0 : index
    %119 = vector.load %arg8[%c56_126, %c0_127] : memref<72x256xf32, #tpu.memory_space<vmem>>, vector<8x256xf32>
    tpu.vector_store %arg8[%c56_126, %c0_127], %118 {strides = array<i32>} : memref<72x256xf32, #tpu.memory_space<vmem>>, vector<8x256xf32>,
    %c239_i32_128 = arith.constant 239 : i32
    %120 = tpu.dynamic_rotate %90 by %c239_i32_128 dim 1 : vector<8x256xf32>, i32 -> vector<8x256xf32>
    %c64_129 = arith.constant 64 : index
    %c0_130 = arith.constant 0 : index
    %121 = vector.load %arg4[%c64_129, %c0_130] : memref<72x256xf32, #tpu.memory_space<vmem>>, vector<8x256xf32>
    %122 = arith.mulf %120, %121 : vector<8x256xf32>
    %c64_131 = arith.constant 64 : index
    %c0_132 = arith.constant 0 : index
    %123 = vector.load %arg8[%c64_131, %c0_132] : memref<72x256xf32, #tpu.memory_space<vmem>>, vector<8x256xf32>
    tpu.vector_store %arg8[%c64_131, %c0_132], %122 {strides = array<i32>} : memref<72x256xf32, #tpu.memory_space<vmem>>, vector<8x256xf32>,
    %c2 = arith.constant 2 : index
    %c0_133 = arith.constant 0 : index
    %c0_134 = arith.constant 0 : index
    %124 = vector.load %arg5[%c2, %c0_133, %c0_134] : memref<3x8x72xf32, #tpu.memory_space<vmem>>, vector<1x8x72xf32>
    %125 = vector.shape_cast %124 : vector<1x8x72xf32> to vector<8x72xf32>
    %c0_135 = arith.constant 0 : index
    %c0_136 = arith.constant 0 : index
    %126 = vector.load %arg8[%c0_135, %c0_136] : memref<72x256xf32, #tpu.memory_space<vmem>>, vector<72x256xf32>
    %cst_137 = arith.constant dense<0.000000e+00> : vector<8x256xf32>
    %127 = tpu.matmul %125, %126, %cst_137 {dimension_numbers = #tpu.dot_dimension_numbers<[1], [0], [0], [1], [0, 0, 1, 1], [], []>} : vector<8x72xf32>, vector<72x256xf32>, vector<8x256xf32> -> vector<8x256xf32>
    %c2_138 = arith.constant 2 : index
    %c0_139 = arith.constant 0 : index
    %c0_140 = arith.constant 0 : index
    %128 = vector.load %arg6[%c2_138, %c0_139, %c0_140] : memref<3x8x1xf32, #tpu.memory_space<vmem>>, vector<1x8x1xf32>
    %129 = vector.shape_cast %128 : vector<1x8x1xf32> to vector<8x1xf32>
    %130 = vector.broadcast %129 : vector<8x1xf32> to vector<8x256xf32>
    %131 = arith.addf %127, %130 : vector<8x256xf32>
    %c0_141 = arith.constant 0 : index
    %c0_142 = arith.constant 0 : index
    %c0_143 = arith.constant 0 : index
    %132 = vector.load %arg3[%c0_141, %c0_142, %c0_143] : memref<1x8x1xf32, #tpu.memory_space<vmem>>, vector<1x8x1xf32>
    %133 = vector.shape_cast %132 : vector<1x8x1xf32> to vector<8x1xf32>
    %134 = vector.broadcast %133 : vector<8x1xf32> to vector<8x256xf32>
    %135 = arith.mulf %131, %134 : vector<8x256xf32>
    %136 = arith.addf %1, %135 : vector<8x256xf32>
    %c0_144 = arith.constant 0 : index
    %c0_145 = arith.constant 0 : index
    %c0_146 = arith.constant 0 : index
    %137 = vector.load %arg7[%c0_144, %c0_145, %c0_146] : memref<1x8x256xf32, #tpu.memory_space<vmem>>, vector<1x8x256xf32>
    %138 = vector.shape_cast %137 : vector<1x8x256xf32> to vector<8x256xf32>
    %139 = vector.shape_cast %136 : vector<8x256xf32> to vector<1x8x256xf32>
    tpu.vector_store %arg7[%c0_144, %c0_145, %c0_146], %139 {strides = array<i32>} : memref<1x8x256xf32, #tpu.memory_space<vmem>>, vector<1x8x256xf32>,
    return
  }
  func.func @transform_0(%arg0: i32) -> (i32, i32, i32) {
    %c0_i32 = arith.constant 0 : i32
    %c0_i32_0 = arith.constant 0 : i32
    %c0_i32_1 = arith.constant 0 : i32
    return %arg0, %c0_i32, %c0_i32_0 : i32, i32, i32
  }
  func.func @transform_1(%arg0: i32) -> (i32, i32, i32) {
    %c0_i32 = arith.constant 0 : i32
    %c0_i32_0 = arith.constant 0 : i32
    %c0_i32_1 = arith.constant 0 : i32
    return %arg0, %c0_i32, %c0_i32_0 : i32, i32, i32
  }
  func.func @transform_2(%arg0: i32) -> (i32, i32, i32) {
    %c0_i32 = arith.constant 0 : i32
    %c0_i32_0 = arith.constant 0 : i32
    %c0_i32_1 = arith.constant 0 : i32
    return %arg0, %c0_i32, %c0_i32_0 : i32, i32, i32
  }
  func.func @transform_3(%arg0: i32) -> (i32, i32) {
    %c0_i32 = arith.constant 0 : i32
    %c0_i32_0 = arith.constant 0 : i32
    %c0_i32_1 = arith.constant 0 : i32
    return %c0_i32, %c0_i32_0 : i32, i32
  }
  func.func @transform_4(%arg0: i32) -> (i32, i32, i32) {
    %c0_i32 = arith.constant 0 : i32
    %c0_i32_0 = arith.constant 0 : i32
    %c0_i32_1 = arith.constant 0 : i32
    %c0_i32_2 = arith.constant 0 : i32
    return %c0_i32, %c0_i32_0, %c0_i32_1 : i32, i32, i32
  }
  func.func @transform_5(%arg0: i32) -> (i32, i32, i32) {
    %c0_i32 = arith.constant 0 : i32
    %c0_i32_0 = arith.constant 0 : i32
    %c0_i32_1 = arith.constant 0 : i32
    %c0_i32_2 = arith.constant 0 : i32
    return %c0_i32, %c0_i32_0, %c0_i32_1 : i32, i32, i32
  }
  func.func @transform_6(%arg0: i32) -> (i32, i32, i32) {
    %c0_i32 = arith.constant 0 : i32
    %c0_i32_0 = arith.constant 0 : i32
    %c0_i32_1 = arith.constant 0 : i32
    return %arg0, %c0_i32, %c0_i32_0 : i32, i32, i32
  }
}

</mosaic_0001>

<bundles_post_ra>
// kernel: interpolator_forward.1
= control target key start
LH: loop header
LB: loop body
LE: loop exit
PB: predicated region body
PF: predicated region fallthrough
CT: control target
= control target key end

     0   :  { %s1093_s21 = smov 0   ;;  %s1472_s0 = inlined_call_operand.vmem [shape: f32[2,8,256], index: 0, kind: input, shape index: {}]   ;;  %s1473_s1 = inlined_call_operand.vmem [shape: f32[2,8,256], index: 1, kind: input, shape index: {}]   ;;  %s1474_s2 = inlined_call_operand.vmem [shape: f32[2,8,1], index: 2, kind: input, shape index: {}]   ;;  %s1475_s3 = inlined_call_operand.vmem [shape: f32[72,256], index: 3, kind: input, shape index: {}]   ;;  %s1476_s4 = inlined_call_operand.vmem [shape: f32[3,8,72], index: 4, kind: input, shape index: {}]   ;;  %s1477_s5 = inlined_call_operand.vmem [shape: f32[3,8,1], index: 5, kind: input, shape index: {}]   ;;  %s1478_s6 = inlined_call_operand.vmem [shape: f32[2,8,256], index: 6, kind: output, shape index: {}]  }
   0x1 LB: > { %s996_s22 = sadd.s32 4294967295, %s1046_s21   ;;  %p1000_p0 = scmp.ge.s32.totalorder %s1046_s21, 1  ;;  %s1046_s21 = sphi %s1093_s21, %s16_s21  }
   0x2   : > { %p231_p1 = scmp.lt.s32.totalorder %s1046_s21, 3 }
   0x4   : > { %p232_p2 = pnand %p1000_p0, %p231_p1 }
   0x5   : > { %p270_p3 = scmp.lt.s32.totalorder (!%p232_p2), %s996_s22, 1  ;;  %s1048_s30 = smov (!%p232_p2), 112  }
   0x6   : > { %235 = sbr.rel (%p232_p2) target bundleno = 1064 (0x428), region = 44  ;;  %s1049_s7 = smov (!%p232_p2), 111  }
   0x7   : > { %s1050_s8 = smov (!%p232_p2), 113   ;;  %s1051_s9 = smov (!%p232_p2), 127  }
   0x8   : > { %s1052_s10 = smov (!%p232_p2), 1   ;;  %s1054_s11 = smov (!%p232_p2), 15  }
   0x9   : > { %s1056_s12 = smov (!%p232_p2), 16   ;;  %s1057_s13 = smov (!%p232_p2), 17  }
   0xb   : > { %s1480_s22 = smov (!%p270_p3, %s996_s22), 1  ;;  %v1053_v6 = vmov 0.0   ;;  %v1055_v7 = vmov 0   ;;  %v422_v8 = vld [vmem:[%s1477_s5] sm:$0xff]  ;;  %v299_v9 = vlaneseq  ;;  %v1168_v13 = vld [vmem:[%s1475_s3 + $0x88] sm:$0xff]  ;;  %v1178_v17 = vld [vmem:[%s1475_s3 + $0x78] sm:$0xff] }
   0xc   : > { %s1104_s23 = sshll.u32 %s1480_s22, 4  ;;  %496 = vmatprep.mubr.f32.mxu0 %v1053_v6  ;;  %697 = vmatprep.mubr.f32.mxu1 %v1053_v6  ;;  %v1173_v14 = vld [vmem:[%s1475_s3 + $0x80] sm:$0xff]  ;;  %v1189_v21 = vld [vmem:[%s1475_s3 + $0x70] sm:$0xff]  ;;  %v1204_v26 = vld [vmem:[%s1475_s3 + $0x68] sm:$0xff]  ;;  %vm428_vm8 = vcmask 588800  }
   0xd   : > { %s274_s26 = scalar_lea.vmem %s1472_s0, %s1104_s23  ;;  %s279_s29 = scalar_lea.vmem %s1473_s1, %s1104_s23  ;;  %1038 = vset.pattern.permute.xlu0 %v1055_v7  ;;  %1039 = vset.pattern.permute.xlu1 %v1055_v7  ;;  %v1161_v10 = vand.u32 127, %v299_v9  ;;  %v1199_v25 = vld [vmem:[%s1475_s3 + $0x60] sm:$0xff]  ;;  %v1218_v35 = vld [vmem:[%s1475_s3 + $0x50] sm:$0xff]  ;;  %v1223_v36 = vld [vmem:[%s1475_s3 + $0x58] sm:$0xff] }
   0xe   : > { %v1114_v0 = vld [vmem:[%s274_s26] sm:$0xff]  ;;  %v1116_v2 = vld [vmem:[%s274_s26 + $0x8] sm:$0xff]  ;;  %v1235_v43 = vld [vmem:[%s1475_s3 + $0x30] sm:$0xff]  ;;  %s288_s16 = scalar_lea.vmem %s1478_s6, %s1104_s23 }
   0xf   : > { %v291_v1 = vld [vmem:[%s279_s29] sm:$0xff]  ;;  %v292_v4 = vld [vmem:[%s279_s29 + $0x8] sm:$0xff]  ;;  %vm381_vm0 = vcmp.lt.s32.totalorder %v1161_v10, 112  ;;  %vm394_vm1 = vcmp.lt.s32.totalorder %v1161_v10, 111  ;;  %vm368_vm2 = vcmp.lt.s32.totalorder %v1161_v10, 113  ;;  %vm355_vm3 = vcmp.lt.s32.totalorder %v1161_v10, 127 }
  0x10   : > { %v1119_v3 = vsub.f32 %v291_v1, %v1114_v0  ;;  %v1126_v5 = vsub.f32 %v292_v4, %v1116_v2  ;;  %vm340_vm4 = vcmp.lt.s32.totalorder %v1161_v10, 1  ;;  %v1240_v44 = vld [vmem:[%s1475_s3 + $0x38] sm:$0xff]  ;;  %vm327_vm5 = vcmp.lt.s32.totalorder %v1161_v10, 15  ;;  %v1254_v51 = vld [vmem:[%s1475_s3 + $0x20] sm:$0xff]  ;;  %v1259_v52 = vld [vmem:[%s1475_s3 + $0x28] sm:$0xff] }
  0x11   : > { %vm314_vm6 = vcmp.lt.s32.totalorder %v1161_v10, 16  ;;  %v1271_v59 = vld [vmem:[%s1475_s3 + $0x10] sm:$0xff]  ;;  %v1276_v60 = vld [vmem:[%s1475_s3 + $0x18] sm:$0xff]  ;;  %vm301_vm7 = vcmp.lt.s32.totalorder %v1161_v10, 17  ;;  %v1293_v7 = vld [vmem:[%s1475_s3 + $0x8] sm:$0xff] }
  0x12   : > { %377 = vrot.lane.b32.xlu1 %v1119_v3, %s1048_s30  ;;  %390 = vrot.lane.b32.xlu0 %v1119_v3, %s1049_s7 }
  0x16   : > { %379 = vrot.lane.b32.xlu1 %v1126_v5, %s1048_s30  ;;  %392 = vrot.lane.b32.xlu0 %v1126_v5, %s1049_s7 }
  0x1a   : > { %366 = vrot.lane.b32.xlu1 %v1126_v5, %s1050_s8  ;;  %364 = vrot.lane.b32.xlu0 %v1119_v3, %s1050_s8 }
  0x1e   : > { %353 = vrot.lane.b32.xlu1 %v1126_v5, %s1051_s9  ;;  %351 = vrot.lane.b32.xlu0 %v1119_v3, %s1051_s9 }
  0x22   : > { %338 = vrot.lane.b32.xlu1 %v1126_v5, %s1052_s10  ;;  %336 = vrot.lane.b32.xlu0 %v1119_v3, %s1052_s10 }
  0x26   : > { %325 = vrot.lane.b32.xlu1 %v1126_v5, %s1054_s11  ;;  %323 = vrot.lane.b32.xlu0 %v1119_v3, %s1054_s11 }
  0x2a   : > { %312 = vrot.lane.b32.xlu1 %v1126_v5, %s1056_s12  ;;  %310 = vrot.lane.b32.xlu0 %v1119_v3, %s1056_s12 }
  0x2e   : > { %297 = vrot.lane.b32.xlu1 %v1126_v5, %s1057_s13  ;;  %295 = vrot.lane.b32.xlu0 %v1119_v3, %s1057_s13 }
  0x32   : > { %425 = vperm.xlu0 %1038, %v422_v8  }
  0x84   : > { %v378_v11 = vpop.permute.xlu1 %377  ;;  %v391_v12 = vpop.permute.xlu0 %390 }
  0x88   : > { %v380_v15 = vpop.permute.xlu1 %379  ;;  %v393_v16 = vpop.permute.xlu0 %392 }
  0x89   : > { %v383_v18 = vsel %vm381_vm0, %v380_v15, %v378_v11  ;;  %v395_v19 = vsel %vm394_vm1, %v391_v12, %v393_v16  ;;  %v396_v20 = vsel %vm394_vm1, %v393_v16, %v391_v12  ;;  %v382_v22 = vsel %vm381_vm0, %v378_v11, %v380_v15 }
  0x8a   : > { %v400_v23 = vmul.f32 %v1168_v13, %v396_v20  ;;  %v399_v24 = vmul.f32 %v1173_v14, %v395_v19  ;;  %v387_v27 = vmul.f32 %v1178_v17, %v383_v18  ;;  %v386_v30 = vmul.f32 %v1189_v21, %v382_v22  ;;  %v403_v18 = vld [vmem:[%s1476_s4] sm:$0xff] }
  0x8c   : > { %v367_v28 = vpop.permute.xlu1 %366  ;;  %446 = vmatprep.subr.mxu0 %v400_v23  ;;  %v365_v29 = vpop.permute.xlu0 %364 }
  0x8d   : > { %v369_v31 = vsel %vm368_vm2, %v365_v29, %v367_v28  ;;  %v370_v32 = vsel %vm368_vm2, %v367_v28, %v365_v29  ;;  %447 = vmatpush1.msra.mxu0 %v399_v24 }
  0x8e   : > { %v373_v33 = vmul.f32 %v1199_v25, %v369_v31  ;;  %v374_v34 = vmul.f32 %v1204_v26, %v370_v32  ;;  %448 = vmatprep.subr.mxu0 %v387_v27 }
  0x8f   : > { %449 = vmatpush1.msra.mxu0 %v386_v30 }
  0x90   : > { %v354_v37 = vpop.permute.xlu1 %353  ;;  %450 = vmatprep.subr.mxu0 %v374_v34  ;;  %v352_v38 = vpop.permute.xlu0 %351 }
  0x91   : > { %v356_v39 = vsel %vm355_vm3, %v352_v38, %v354_v37  ;;  %v357_v40 = vsel %vm355_vm3, %v354_v37, %v352_v38  ;;  %451 = vmatpush1.msra.mxu0 %v373_v33 }
  0x92   : > { %v360_v41 = vmul.f32 %v1218_v35, %v356_v39  ;;  %v361_v42 = vmul.f32 %v1223_v36, %v357_v40 }
  0x94   : > { %v339_v45 = vpop.permute.xlu1 %338  ;;  %452 = vmatprep.subr.mxu0 %v361_v42  ;;  %v337_v46 = vpop.permute.xlu0 %336 }
  0x95   : > { %v341_v47 = vsel %vm340_vm4, %v337_v46, %v339_v45  ;;  %v342_v48 = vsel %vm340_vm4, %v339_v45, %v337_v46  ;;  %453 = vmatpush1.msra.mxu0 %v360_v41 }
  0x96   : > { %v345_v49 = vmul.f32 %v1235_v43, %v342_v48  ;;  %v346_v50 = vmul.f32 %v1240_v44, %v341_v47  ;;  %454 = vmatprep.subr.mxu0 %v1126_v5  ;;  %v1288_v5 = vld [vmem:[%s1475_s3] sm:$0xff] }
  0x97   : > { %455 = vmatpush1.msra.mxu0 %v1119_v3 }
  0x98   : > { %v326_v53 = vpop.permute.xlu1 %325  ;;  %456 = vmatprep.subr.mxu0 %v346_v50  ;;  %v324_v54 = vpop.permute.xlu0 %323 }
  0x99   : > { %v328_v55 = vsel %vm327_vm5, %v324_v54, %v326_v53  ;;  %v329_v56 = vsel %vm327_vm5, %v326_v53, %v324_v54  ;;  %457 = vmatpush1.msra.mxu0 %v345_v49 }
  0x9a   : > { %v332_v57 = vmul.f32 %v1254_v51, %v329_v56  ;;  %v333_v58 = vmul.f32 %v1259_v52, %v328_v55 }
  0x9c   : > { %v313_v61 = vpop.permute.xlu1 %312  ;;  %458 = vmatprep.subr.mxu0 %v333_v58  ;;  %v311_v62 = vpop.permute.xlu0 %310 }
  0x9d   : > { %v315_v63 = vsel %vm314_vm6, %v311_v62, %v313_v61  ;;  %v316_v1 = vsel %vm314_vm6, %v313_v61, %v311_v62  ;;  %459 = vmatpush1.msra.mxu0 %v332_v57 }
  0x9e   : > { %v319_v3 = vmul.f32 %v1271_v59, %v316_v1  ;;  %v320_v4 = vmul.f32 %v1276_v60, %v315_v63 }
  0xa0   : > { %v298_v8 = vpop.permute.xlu1 %297  ;;  %460 = vmatprep.subr.mxu0 %v320_v4  ;;  %v296_v9 = vpop.permute.xlu0 %295 }
  0xa1   : > { %v302_v11 = vsel %vm301_vm7, %v296_v9, %v298_v8  ;;  %v303_v12 = vsel %vm301_vm7, %v298_v8, %v296_v9  ;;  %461 = vmatpush1.msra.mxu0 %v319_v3 }
  0xa2   : > { %v306_v15 = vmul.f32 %v1288_v5, %v303_v12  ;;  %v307_v16 = vmul.f32 %v1293_v7, %v302_v11 }
  0xa4   : > { %462 = vmatprep.subr.mxu0 %v307_v16 }
  0xa5   : > { %463 = vmatpush1.msra.mxu0 %v306_v15 }
  0xa6   : > { %1008 = vmatmul.mubr.msk.f32.vlgmr.msra.gmra.mxu0 %vm428_vm8, %v403_v18 }
  0xa7   : > { %898 = vmatprep.mubr.f32.mxu0 %v1053_v6  ;;  %v1010_v6 = vld [vmem:[%s1477_s5 + $0x8] sm:$0xff] }
  0xad   : > { %v426_v19 = vpop.permute.xlu0 %425 }
 0x166   : > { %v498_v20 = vpop.f32.mrf.mxu0 }
 0x167   : > { %v499_v22 = vadd.f32 %v498_v20, %v426_v19 }
 0x168   : > { %v500_v23 = vpop.f32.mrf.mxu0 }
 0x169   : > { %v503_v24 = vmax.f32 %v499_v22, 0.0  ;;  %v501_v27 = vadd.f32 %v500_v23, %v426_v19 }
 0x16b   : > { %579 = vrot.lane.b32.xlu0 %v503_v24, %s1048_s30  ;;  %591 = vrot.lane.b32.xlu1 %v503_v24, %s1049_s7  ;;  %v504_v28 = vmax.f32 %v501_v27, 0.0 }
 0x16f   : > { %567 = vrot.lane.b32.xlu0 %v503_v24, %s1050_s8  ;;  %593 = vrot.lane.b32.xlu1 %v504_v28, %s1049_s7 }
 0x173   : > { %555 = vrot.lane.b32.xlu0 %v503_v24, %s1051_s9  ;;  %581 = vrot.lane.b32.xlu1 %v504_v28, %s1048_s30 }
 0x177   : > { %541 = vrot.lane.b32.xlu0 %v503_v24, %s1052_s10  ;;  %569 = vrot.lane.b32.xlu1 %v504_v28, %s1050_s8 }
 0x17b   : > { %529 = vrot.lane.b32.xlu0 %v503_v24, %s1054_s11  ;;  %557 = vrot.lane.b32.xlu1 %v504_v28, %s1051_s9 }
 0x17f   : > { %517 = vrot.lane.b32.xlu0 %v503_v24, %s1056_s12  ;;  %543 = vrot.lane.b32.xlu1 %v504_v28, %s1052_s10 }
 0x183   : > { %505 = vrot.lane.b32.xlu0 %v503_v24, %s1057_s13  ;;  %531 = vrot.lane.b32.xlu1 %v504_v28, %s1054_s11 }
 0x187   : > { %627 = vperm.xlu0 %1038, %v1010_v6   ;;  %519 = vrot.lane.b32.xlu1 %v504_v28, %s1056_s12 }
 0x18b   : > { %507 = vrot.lane.b32.xlu1 %v504_v28, %s1057_s13 }
 0x1dd   : > { %v580_v29 = vpop.permute.xlu0 %579  ;;  %v592_v30 = vpop.permute.xlu1 %591 }
 0x1e1   : > { %v568_v31 = vpop.permute.xlu0 %567  ;;  %v594_v32 = vpop.permute.xlu1 %593 }
 0x1e2   : > { %v595_v33 = vsel %vm394_vm1, %v592_v30, %v594_v32  ;;  %v596_v34 = vsel %vm394_vm1, %v594_v32, %v592_v30  ;;  %v1009_v32 = vld [vmem:[%s1476_s4 + $0x8] sm:$0xff] }
 0x1e3   : > { %v600_v37 = vmul.f32 %v596_v34, %v1168_v13  ;;  %v599_v38 = vmul.f32 %v595_v33, %v1173_v14 }
 0x1e5   : > { %v556_v39 = vpop.permute.xlu0 %555  ;;  %647 = vmatprep.subr.mxu1 %v600_v37  ;;  %v582_v40 = vpop.permute.xlu1 %581 }
 0x1e6   : > { %v583_v41 = vsel %vm381_vm0, %v580_v29, %v582_v40  ;;  %v584_v42 = vsel %vm381_vm0, %v582_v40, %v580_v29  ;;  %648 = vmatpush1.msra.mxu1 %v599_v38 }
 0x1e7   : > { %v587_v45 = vmul.f32 %v583_v41, %v1189_v21  ;;  %v588_v46 = vmul.f32 %v584_v42, %v1178_v17  ;;  %v1013_v42 = vld [vmem:[%s1477_s5 + $0x10] sm:$0xff] }
 0x1e9   : > { %649 = vmatprep.subr.mxu1 %v588_v46  ;;  %v570_v47 = vpop.permute.xlu1 %569  ;;  %v542_v50 = vpop.permute.xlu0 %541 }
 0x1ea   : > { %v571_v48 = vsel %vm368_vm2, %v568_v31, %v570_v47  ;;  %v572_v49 = vsel %vm368_vm2, %v570_v47, %v568_v31  ;;  %650 = vmatpush1.msra.mxu1 %v587_v45 }
 0x1eb   : > { %v575_v53 = vmul.f32 %v571_v48, %v1199_v25  ;;  %v576_v54 = vmul.f32 %v572_v49, %v1204_v26 }
 0x1ed   : > { %651 = vmatprep.subr.mxu1 %v576_v54  ;;  %v558_v55 = vpop.permute.xlu1 %557  ;;  %v530_v62 = vpop.permute.xlu0 %529 }
 0x1ee   : > { %v559_v56 = vsel %vm355_vm3, %v556_v39, %v558_v55  ;;  %v560_v57 = vsel %vm355_vm3, %v558_v55, %v556_v39  ;;  %652 = vmatpush1.msra.mxu1 %v575_v53 }
 0x1ef   : > { %v563_v58 = vmul.f32 %v559_v56, %v1218_v35  ;;  %v564_v61 = vmul.f32 %v560_v57, %v1223_v36 }
 0x1f1   : > { %653 = vmatprep.subr.mxu1 %v564_v61  ;;  %v544_v63 = vpop.permute.xlu1 %543  ;;  %v518_v15 = vpop.permute.xlu0 %517 }
 0x1f2   : > { %v545_v1 = vsel %vm340_vm4, %v542_v50, %v544_v63  ;;  %v546_v3 = vsel %vm340_vm4, %v544_v63, %v542_v50  ;;  %654 = vmatpush1.msra.mxu1 %v563_v58 }
 0x1f3   : > { %v549_v4 = vmul.f32 %v546_v3, %v1235_v43  ;;  %v550_v8 = vmul.f32 %v545_v1, %v1240_v44  ;;  %655 = vmatprep.subr.mxu1 %v504_v28 }
 0x1f4   : > { %656 = vmatpush1.msra.mxu1 %v503_v24 }
 0x1f5   : > { %657 = vmatprep.subr.mxu1 %v550_v8  ;;  %v532_v9 = vpop.permute.xlu1 %531  ;;  %v506_v27 = vpop.permute.xlu0 %505 }
 0x1f6   : > { %v533_v11 = vsel %vm327_vm5, %v530_v62, %v532_v9  ;;  %v534_v12 = vsel %vm327_vm5, %v532_v9, %v530_v62  ;;  %658 = vmatpush1.msra.mxu1 %v549_v4 }
 0x1f7   : > { %v537_v16 = vmul.f32 %v534_v12, %v1254_v51  ;;  %v538_v18 = vmul.f32 %v533_v11, %v1259_v52 }
 0x1f9   : > { %659 = vmatprep.subr.mxu1 %v538_v18  ;;  %v520_v19 = vpop.permute.xlu1 %519 }
 0x1fa   : > { %v521_v20 = vsel %vm314_vm6, %v518_v15, %v520_v19  ;;  %v522_v22 = vsel %vm314_vm6, %v520_v19, %v518_v15  ;;  %660 = vmatpush1.msra.mxu1 %v537_v16 }
 0x1fb   : > { %v525_v23 = vmul.f32 %v522_v22, %v1271_v59  ;;  %v526_v24 = vmul.f32 %v521_v20, %v1276_v60 }
 0x1fd   : > { %661 = vmatprep.subr.mxu1 %v526_v24  ;;  %v508_v28 = vpop.permute.xlu1 %507 }
 0x1fe   : > { %v509_v6 = vsel %vm301_vm7, %v506_v27, %v508_v28  ;;  %v510_v29 = vsel %vm301_vm7, %v508_v28, %v506_v27  ;;  %662 = vmatpush1.msra.mxu1 %v525_v23 }
 0x1ff   : > { %v513_v30 = vmul.f32 %v510_v29, %v1288_v5  ;;  %v514_v31 = vmul.f32 %v509_v6, %v1293_v7 }
 0x201   : > { %663 = vmatprep.subr.mxu1 %v514_v31 }
 0x202   : > { %664 = vmatpush1.msra.mxu1 %v513_v30  ;;  %v628_v33 = vpop.permute.xlu0 %627 }
 0x203   : > { %1011 = vmatmul.mubr.msk.f32.vlgmr.msra.gmra.mxu1 %vm428_vm8, %v1009_v32 }
 0x2c3   : > { %v699_v34 = vpop.f32.mrf.mxu1 }
 0x2c4   : > { %v700_v37 = vadd.f32 %v699_v34, %v628_v33 }
 0x2c5   : > { %v701_v38 = vpop.f32.mrf.mxu1 }
 0x2c6   : > { %v1377_v39 = vmax.f32 %v700_v37, 0.0  ;;  %v702_v40 = vadd.f32 %v701_v38, %v628_v33 }
 0x2c8   : > { %v705_v41 = vmax.f32 %v702_v40, 0.0  ;;  %792 = vrot.lane.b32.xlu1 %v1377_v39, %s1049_s7 }
 0x2ca   : > { %794 = vrot.lane.b32.xlu0 %v705_v41, %s1049_s7 }
 0x2cc   : > { %780 = vrot.lane.b32.xlu1 %v1377_v39, %s1048_s30 }
 0x2ce   : > { %782 = vrot.lane.b32.xlu0 %v705_v41, %s1048_s30  ;;  %s1005_s30 = sshll.u32 %s1480_s22, 3 }
 0x2d0   : > { %768 = vrot.lane.b32.xlu1 %v1377_v39, %s1050_s8 }
 0x2d2   : > { %770 = vrot.lane.b32.xlu0 %v705_v41, %s1050_s8 }
 0x2d4   : > { %756 = vrot.lane.b32.xlu1 %v1377_v39, %s1051_s9 }
 0x2d6   : > { %758 = vrot.lane.b32.xlu0 %v705_v41, %s1051_s9  ;;  %s283_s9 = scalar_lea.vmem %s1474_s2, %s1005_s30 }
 0x2d7   : > { %v905_v45 = vld [vmem:[%s283_s9] sm:$0xff] }
 0x2d8   : > { %742 = vrot.lane.b32.xlu1 %v1377_v39, %s1052_s10 }
 0x2da   : > { %744 = vrot.lane.b32.xlu0 %v705_v41, %s1052_s10 }
 0x2dc   : > { %730 = vrot.lane.b32.xlu1 %v1377_v39, %s1054_s11 }
 0x2de   : > { %732 = vrot.lane.b32.xlu0 %v705_v41, %s1054_s11 }
 0x2e0   : > { %718 = vrot.lane.b32.xlu1 %v1377_v39, %s1056_s12 }
 0x2e2   : > { %720 = vrot.lane.b32.xlu0 %v705_v41, %s1056_s12 }
 0x2e4   : > { %706 = vrot.lane.b32.xlu1 %v1377_v39, %s1057_s13 }
 0x2e6   : > { %708 = vrot.lane.b32.xlu0 %v705_v41, %s1057_s13 }
 0x2e8   : > { %828 = vperm.xlu1 %1039, %v1013_v42  }
 0x2ea   : > { %908 = vperm.xlu0 %1038, %v905_v45  }
 0x33a   : > { %v793_v46 = vpop.permute.xlu1 %792 }
 0x33c   : > { %v795_v47 = vpop.permute.xlu0 %794 }
 0x33d   : > { %v796_v48 = vsel %vm394_vm1, %v793_v46, %v795_v47  ;;  %v797_v49 = vsel %vm394_vm1, %v795_v47, %v793_v46 }
 0x33e   : > { %v800_v50 = vmul.f32 %v796_v48, %v1173_v14  ;;  %v801_v53 = vmul.f32 %v797_v49, %v1168_v13  ;;  %v781_v54 = vpop.permute.xlu1 %780 }
 0x340   : > { %v783_v55 = vpop.permute.xlu0 %782  ;;  %848 = vmatprep.subr.mxu0 %v801_v53 }
 0x341   : > { %v784_v56 = vsel %vm381_vm0, %v781_v54, %v783_v55  ;;  %v785_v57 = vsel %vm381_vm0, %v783_v55, %v781_v54  ;;  %849 = vmatpush1.msra.mxu0 %v800_v50 }
 0x342   : > { %v788_v58 = vmul.f32 %v784_v56, %v1189_v21  ;;  %v789_v61 = vmul.f32 %v785_v57, %v1178_v17  ;;  %v769_v62 = vpop.permute.xlu1 %768 }
 0x344   : > { %v771_v63 = vpop.permute.xlu0 %770  ;;  %850 = vmatprep.subr.mxu0 %v789_v61 }
 0x345   : > { %v772_v13 = vsel %vm368_vm2, %v769_v62, %v771_v63  ;;  %v773_v14 = vsel %vm368_vm2, %v771_v63, %v769_v62  ;;  %851 = vmatpush1.msra.mxu0 %v788_v58 }
 0x346   : > { %v776_v1 = vmul.f32 %v772_v13, %v1199_v25  ;;  %v777_v3 = vmul.f32 %v773_v14, %v1204_v26  ;;  %v757_v4 = vpop.permute.xlu1 %756 }
 0x348   : > { %v759_v8 = vpop.permute.xlu0 %758  ;;  %852 = vmatprep.subr.mxu0 %v777_v3 }
 0x349   : > { %v760_v17 = vsel %vm355_vm3, %v757_v4, %v759_v8  ;;  %v761_v21 = vsel %vm355_vm3, %v759_v8, %v757_v4  ;;  %853 = vmatpush1.msra.mxu0 %v776_v1 }
 0x34a   : > { %v764_v9 = vmul.f32 %v760_v17, %v1218_v35  ;;  %v765_v11 = vmul.f32 %v761_v21, %v1223_v36  ;;  %v743_v12 = vpop.permute.xlu1 %742 }
 0x34c   : > { %v745_v15 = vpop.permute.xlu0 %744  ;;  %854 = vmatprep.subr.mxu0 %v765_v11 }
 0x34d   : > { %v746_v25 = vsel %vm340_vm4, %v743_v12, %v745_v15  ;;  %v747_v26 = vsel %vm340_vm4, %v745_v15, %v743_v12  ;;  %855 = vmatpush1.msra.mxu0 %v764_v9 }
 0x34e   : > { %v750_v16 = vmul.f32 %v747_v26, %v1235_v43  ;;  %v751_v18 = vmul.f32 %v746_v25, %v1240_v44  ;;  %856 = vmatprep.subr.mxu0 %v705_v41  ;;  %v731_v19 = vpop.permute.xlu1 %730 }
 0x34f   : > { %857 = vmatpush1.msra.mxu0 %v1377_v39 }
 0x350   : > { %v733_v35 = vpop.permute.xlu0 %732  ;;  %858 = vmatprep.subr.mxu0 %v751_v18 }
 0x351   : > { %v734_v36 = vsel %vm327_vm5, %v731_v19, %v733_v35  ;;  %v735_v20 = vsel %vm327_vm5, %v733_v35, %v731_v19  ;;  %859 = vmatpush1.msra.mxu0 %v750_v16 }
 0x352   : > { %v738_v22 = vmul.f32 %v735_v20, %v1254_v51  ;;  %v739_v23 = vmul.f32 %v734_v36, %v1259_v52  ;;  %v719_v43 = vpop.permute.xlu1 %718 }
 0x354   : > { %v721_v24 = vpop.permute.xlu0 %720  ;;  %860 = vmatprep.subr.mxu0 %v739_v23 }
 0x355   : > { %v722_v44 = vsel %vm314_vm6, %v719_v43, %v721_v24  ;;  %v723_v27 = vsel %vm314_vm6, %v721_v24, %v719_v43  ;;  %861 = vmatpush1.msra.mxu0 %v738_v22 }
 0x356   : > { %v726_v28 = vmul.f32 %v723_v27, %v1271_v59  ;;  %v727_v6 = vmul.f32 %v722_v44, %v1276_v60  ;;  %v707_v29 = vpop.permute.xlu1 %706  ;;  %v1012_v59 = vld [vmem:[%s1476_s4 + $0x10] sm:$0xff] }
 0x358   : > { %v709_v30 = vpop.permute.xlu0 %708  ;;  %862 = vmatprep.subr.mxu0 %v727_v6 }
 0x359   : > { %v710_v51 = vsel %vm301_vm7, %v707_v29, %v709_v30  ;;  %v711_v52 = vsel %vm301_vm7, %v709_v30, %v707_v29  ;;  %863 = vmatpush1.msra.mxu0 %v726_v28 }
 0x35a   : > { %v714_v31 = vmul.f32 %v711_v52, %v1288_v5  ;;  %v715_v32 = vmul.f32 %v710_v51, %v1293_v7 }
 0x35c   : > { %864 = vmatprep.subr.mxu0 %v715_v32 }
 0x35d   : > { %865 = vmatpush1.msra.mxu0 %v714_v31 }
 0x35e   : > { %1014 = vmatmul.mubr.msk.f32.vlgmr.msra.gmra.mxu0 %vm428_vm8, %v1012_v59 }
 0x363   : > { %v829_v60 = vpop.permute.xlu1 %828 }
 0x365   : > { %v909_v37 = vpop.permute.xlu0 %908 }
 0x41e   : > { %v900_v33 = vpop.f32.mrf.mxu0 }
 0x41f   : > { %v901_v34 = vadd.f32 %v900_v33, %v829_v60 }
 0x420   : > { %v902_v10 = vpop.f32.mrf.mxu0 }
 0x421   : > { %v911_v38 = vmul.f32 %v909_v37, %v901_v34  ;;  %v903_v39 = vadd.f32 %v902_v10, %v829_v60 }
 0x423   : > { %v913_v5 = vadd.f32 %v911_v38, %v1114_v0  ;;  %v912_v7 = vmul.f32 %v909_v37, %v903_v39 }
 0x425   : > { %915 = vst [vmem:[%s288_s16] sm:$0xff] %v913_v5  ;;  %v914_v40 = vadd.f32 %v912_v7, %v1116_v2 }
 0x427   : > { %916 = vst [vmem:[%s288_s16 + $0x8] sm:$0xff] %v914_v40 }
 0x428 PF: > { %s16_s21 = sadd.s32 1, %s1046_s21  }
 0x429   : > { %p13_p4 = scmp.ge.s32.totalorder %s16_s21, 4  }
 0x42b   :  { %15 = sbr.rel (!%p13_p4) target bundleno = 1 (0x1), region = 84 }

</bundles_post_ra>
